<compile_context>
chip_gen: v7x
topology: tpu7x:2x2x1
jax: 0.10.0
libtpu: 0.0.40
codegen_flags: <defaults>
</compile_context>

<pallas_src>
import functools
import numpy as np
import jax
import jax.numpy as jnp
from jax.experimental import pallas as pl
from jax.experimental.pallas import tpu as pltpu


# ---------------------------------------------------------------------------
# scipy-free reimplementation of design_lowpass_filter (firwin + kaiser window)
# ---------------------------------------------------------------------------
def _kaiser_atten(numtaps, width):
    return 2.285 * (numtaps - 1) * np.pi * width + 7.95


def _kaiser_beta(a):
    if a > 50:
        return 0.1102 * (a - 8.7)
    elif a > 21:
        return 0.5842 * (a - 21) ** 0.4 + 0.07886 * (a - 21)
    return 0.0


def design_lowpass_filter(numtaps, cutoff, width, fs):
    assert numtaps >= 2
    nyq = fs / 2.0
    cutoff_n = cutoff / nyq
    beta = _kaiser_beta(_kaiser_atten(numtaps, width / nyq))
    alpha = 0.5 * (numtaps - 1)
    m = np.arange(numtaps) - alpha
    h = cutoff_n * np.sinc(cutoff_n * m)
    h = h * np.kaiser(numtaps, beta)
    h = h / np.sum(h)          # DC gain == 1 (pass_zero lowpass)
    return h.astype(np.float32)


# ---------------------------------------------------------------------------
# Pallas kernel: single invocation, both directions lane-packed
# ---------------------------------------------------------------------------
def _dwsk_kernel(freqs_ref, phases_ref, hz_ref, vt_ref, gs_ref, fmat_ref,
                 hz_out_ref, vt_out_ref, *, in_dim, hidden, in_size, density):
    # freqs_ref  : [hidden, 2]              per-row (freq_x, freq_y)
    # phases_ref : [hidden, 1]              per-row phase
    # hz_ref     : [in_dim, hidden]         hz coefficients (raw)
    # vt_ref     : [in_dim, hidden]         vt coefficients (raw)
    # gs_ref     : [1, 1] (SMEM)            learned gauss_sigma parameter
    # fmat_ref   : [2, 2*in_size, out_size] strided-Toeplitz lowpass/decimate,
    #                                       slab 0 = hz rows, slab 1 = vt rows
    # hz_out_ref : [in_dim, out_size]       final hz weights (out dtype)
    # vt_out_ref : [in_dim, out_size]       final vt weights (out dtype)
    two_in = 2 * in_size
    f32 = jnp.float32

    # --- constants synthesized in-kernel from a single lane iota (VALU slack) ---
    lane_i = jax.lax.broadcasted_iota(jnp.int32, (1, two_in), 1)   # [1, 2*in_size]
    vt_mask = (lane_i >= in_size).astype(f32)                      # 1 in vt lanes
    hz_mask = 1.0 - vt_mask
    lane_local = lane_i.astype(f32) - vt_mask * float(in_size)     # 0..in_size-1 per half
    gf = lane_local - (in_size - 1) / 2.0                          # gaussian abscissa
    lin = gf * (2.0 / (in_size + 1))                               # sample-grid abscissa
    lin_h = lin * hz_mask                                          # hz half, 0 elsewhere
    lin_v = lin * vt_mask                                          # vt half, 0 elsewhere
    neg_half_gf2 = -(gf * gf) * 0.5

    # --- sinusoid phase grid, lane-packed [hidden, 2*in_size] (lane-dense VPU/EUP) ---
    fx = freqs_ref[:, 0:1]                                         # [hidden, 1]
    fy = freqs_ref[:, 1:2]                                         # [hidden, 1]
    ph = phases_ref[...]                                           # [hidden, 1]
    g = fx * lin_h + fy * lin_v + ph                               # [hidden, 2*in_size]

    # constant scalars exp(-1/(2*density^2)) / sqrt(hidden) folded in with one vmul
    scale = float(np.exp(-1.0 / (2.0 * density ** 2)) / np.sqrt(hidden))
    s = jnp.sin(g * (2.0 * np.pi)) * scale
    s_hz = s * hz_mask
    s_vt = s - s_hz

    # --- lane-packed weights via two small MXU dots (f32; latency-bound anyway) ---
    w = (jnp.dot(hz_ref[...], s_hz, preferred_element_type=f32) +
         jnp.dot(vt_ref[...], s_vt, preferred_element_type=f32))   # [in_dim, 2*in_size]

    # per-direction global mean subtraction (complementary masks, no cancellation)
    n = float(in_dim * in_size)
    mean_h = jnp.sum(w * hz_mask) / n
    mean_v = jnp.sum(w * vt_mask) / n
    w = w - (hz_mask * mean_h + vt_mask * mean_v)

    # per-column RMS normalization over in_dim (columns never mix directions)
    w = w * jax.lax.rsqrt(jnp.mean(w * w, axis=0, keepdims=True) + 1e-8)

    # learned gaussian envelope: exp(-gf^2 / (2 * (1 + gs^2/5)))
    gs = gs_ref[0, 0]
    inv_sigma = 1.0 / (1.0 + gs * gs / 5.0)
    w = w * jnp.exp(neg_half_gf2 * inv_sigma)

    # valid conv1d + stride-2 decimation fused as strided-Toeplitz matmuls (MXU),
    # emitting the two FINAL outputs directly (cast in-kernel).
    hz_out_ref[...] = jnp.dot(w, fmat_ref[0],
                              preferred_element_type=f32).astype(hz_out_ref.dtype)
    vt_out_ref[...] = jnp.dot(w, fmat_ref[1],
                              preferred_element_type=f32).astype(vt_out_ref.dtype)


# ---------------------------------------------------------------------------
# Static operand (depends only on low_filter / in_size / out_size): build once
# ---------------------------------------------------------------------------
@functools.lru_cache(maxsize=None)
def _build_fmat(low_filter_key, in_size, out_size):
    low_filter = np.asarray(low_filter_key, dtype=np.float32)
    num_taps = low_filter.shape[0]
    # strided-Toeplitz matrix: valid conv1d with low_filter then [::2] decimation
    fmat = np.zeros((in_size, out_size), np.float32)
    for j in range(out_size):
        fmat[2 * j: 2 * j + num_taps, j] = low_filter
    # slab 0 acts on the hz lane half, slab 1 on the vt lane half of packed w
    stacked = np.zeros((2, 2 * in_size, out_size), np.float32)
    stacked[0, :in_size, :] = fmat
    stacked[1, in_size:, :] = fmat
    return jnp.asarray(stacked)


# ---------------------------------------------------------------------------
# Jitted forward implementation (remaining glue is metadata-only reshapes)
# ---------------------------------------------------------------------------
@functools.partial(jax.jit,
                   static_argnames=("in_dim", "hidden", "in_size", "out_size",
                                    "density", "out_dtype"))
def _forward_impl(freqs, phases, hz_outdim, vt_outdim, gauss_sigma, fmat, *,
                  in_dim, hidden, in_size, out_size, density, out_dtype):
    freqs = freqs.astype(jnp.float32)                        # [hidden, 2]
    phases = jnp.reshape(phases, (hidden, 1)).astype(jnp.float32)
    hz_outdim = hz_outdim.astype(jnp.float32)                # [in_dim, hidden]
    vt_outdim = vt_outdim.astype(jnp.float32)                # [in_dim, hidden]
    gs = jnp.reshape(gauss_sigma, (1, 1)).astype(jnp.float32)

    kernel = functools.partial(_dwsk_kernel, in_dim=in_dim, hidden=hidden,
                               in_size=in_size, density=density)
    vmem = pl.BlockSpec(memory_space=pltpu.MemorySpace.VMEM)
    smem = pl.BlockSpec(memory_space=pltpu.MemorySpace.SMEM)

    hz, vt = pl.pallas_call(
        kernel,
        out_shape=(jax.ShapeDtypeStruct((in_dim, out_size), out_dtype),
                   jax.ShapeDtypeStruct((in_dim, out_size), out_dtype)),
        in_specs=[vmem, vmem, vmem, vmem, smem, vmem],
        out_specs=(vmem, vmem),
    )(freqs, phases, hz_outdim, vt_outdim, gs, fmat)

    # pure-metadata reshapes (only add size-1 dims)
    return (hz.reshape(in_dim, 1, 1, out_size),
            vt.reshape(in_dim, 1, out_size, 1))


def depthwise_synthesis_kernel_forward(x, params):
    """Returns (hz_weight, vt_weight) matching the PyTorch module's forward."""
    low_filter = np.asarray(params["low_filter"], np.float32)
    in_size = int(params["in_size"])
    out_size = int(params["out_size"])

    # The kernel rebuilds the gaussian abscissa from the lane index; guard against
    # a checkpoint-surgered gauss_filter buffer silently diverging from it.
    if "gauss_filter" in params:
        gf_expected = np.arange(in_size, dtype=np.float32) - (in_size - 1) / 2.0
        gf_given = np.asarray(params["gauss_filter"], np.float32).reshape(-1)
        assert np.allclose(gf_given, gf_expected), \
            "gauss_filter buffer differs from centered arange; kernel would diverge"

    fmat = _build_fmat(tuple(float(v) for v in low_filter), in_size, out_size)
    return _forward_impl(
        params["freqs"], params["phases"],
        params["hz_outdim"], params["vt_outdim"],
        jnp.asarray(params["gauss_sigma"], jnp.float32),
        fmat,
        in_dim=int(params["in_dim"]), hidden=int(params["hidden_dim"]),
        in_size=in_size, out_size=out_size, density=int(params["density"]),
        out_dtype=np.dtype(x.dtype))


# ---------------------------------------------------------------------------
# Pure-JAX reference (mirrors the PyTorch code) for correctness checking
# ---------------------------------------------------------------------------
def _reference_forward(x, params):
    freqs, phases = params["freqs"], params["phases"]
    in_size, out_size = params["in_size"], params["out_size"]
    hidden, density = params["hidden_dim"], params["density"]
    low_filter = jnp.asarray(params["low_filter"])
    num_taps = low_filter.shape[0]

    lin = (jnp.arange(in_size, dtype=jnp.float32) - (in_size - 1) / 2.0) \
          * (2.0 / (in_size + 1))
    x_grid = freqs[:, 0:1] * lin[None, :] + phases[:, None]
    y_grid = freqs[:, 1:2] * lin[None, :] + phases[:, None]

    def sample_weight(grid, coeff):
        s = jnp.sin(grid * 2 * np.pi) * np.exp(-1.0 / (2.0 * density ** 2))
        w = jnp.einsum('cg,ic->ig', s, coeff) / np.sqrt(hidden)
        w = w - w.mean()
        w = w * jax.lax.rsqrt(jnp.mean(w ** 2, axis=0, keepdims=True) + 1e-8)
        gsig = 1.0 + params["gauss_sigma"] ** 2 / 5.0
        gf = jnp.exp(-params["gauss_filter"] ** 2 / (2.0 * gsig))
        w = w * gf
        conv = jnp.stack(
            [jnp.sum(w[:, k:k + num_taps] * low_filter[None, :], axis=1)
             for k in range(in_size - num_taps + 1)], axis=1)
        return conv[:, ::2]

    hz = sample_weight(x_grid, params["hz_outdim"])
    vt = sample_weight(y_grid, params["vt_outdim"])
    in_dim = params["in_dim"]
    return (hz.reshape(in_dim, 1, 1, out_size).astype(x.dtype),
            vt.reshape(in_dim, 1, out_size, 1).astype(x.dtype))


# ---------------------------------------------------------------------------
if __name__ == "__main__":
    # Module hyperparameters (small, consistent with __init__ constraints)
    in_dim, out_dim = 8, 8
    hidden_dim = min(in_dim, out_dim)
    init_size = 16
    in_sampling_rate = 16
    max_sampling_rate = 32
    cutoff = 8.0
    halfwidth = 2.0
    w0_init = 8.0
    density = 1

    out_size = init_size
    in_size = (init_size + 1) // 2 * 4 * (max_sampling_rate // in_sampling_rate)
    num_taps = in_size - out_size * 2 + 2
    low_filter = design_lowpass_filter(
        numtaps=num_taps, cutoff=cutoff, width=halfwidth * 2,
        fs=cutoff * 2 ** 1.1)

    # Deterministic parameter initialization (matches __init__ shapes)
    key = jax.random.PRNGKey(0)
    k1, k2, k3, k4 = jax.random.split(key, 4)
    freqs = jax.random.normal(k1, (hidden_dim, 2), jnp.float32)
    radii = jnp.sqrt(jnp.sum(freqs ** 2, axis=1, keepdims=True))
    freqs = freqs / (radii * jnp.exp(radii ** 2) ** 0.25)
    freqs = freqs * w0_init
    phases = jax.random.uniform(k2, (hidden_dim,), jnp.float32) - 0.5
    hz_outdim = jax.random.normal(k3, (in_dim, hidden_dim), jnp.float32)
    vt_outdim = jax.random.normal(k4, (in_dim, hidden_dim), jnp.float32)
    gauss_sigma = jnp.float32(1.0)
    gauss_filter = (jnp.arange(in_size, dtype=jnp.float32)
                    - (in_size - 1) / 2.0).reshape(1, in_size)

    params = dict(freqs=freqs, phases=phases, hz_outdim=hz_outdim,
                  vt_outdim=vt_outdim, gauss_sigma=gauss_sigma,
                  gauss_filter=gauss_filter, low_filter=low_filter,
                  in_dim=in_dim, hidden_dim=hidden_dim, in_size=in_size,
                  out_size=out_size, density=density)

    # x is only used for dtype (forward returns synthesized depthwise weights)
    x = jax.random.normal(jax.random.PRNGKey(1), (2, in_dim, 16, 16), jnp.float32)

    hz_w, vt_w = depthwise_synthesis_kernel_forward(x, params)
    jax.block_until_ready((hz_w, vt_w))

    hz_ref, vt_ref = _reference_forward(x, params)
    assert hz_w.shape == (in_dim, 1, 1, out_size)
    assert vt_w.shape == (in_dim, 1, out_size, 1)
    np.testing.assert_allclose(np.asarray(hz_w), np.asarray(hz_ref),
                               rtol=1e-4, atol=1e-4)
    np.testing.assert_allclose(np.asarray(vt_w), np.asarray(vt_ref),
                               rtol=1e-4, atol=1e-4)
    print("KERNEL_OK")
</pallas_src>

<mosaic_0001>
module attributes {stable_mosaic.version = 11 : i64} {
  func.func @_dwsk_kernel(%arg0: memref<8x2xf32, #tpu.memory_space<vmem>>, %arg1: memref<8x1xf32, #tpu.memory_space<vmem>>, %arg2: memref<8x8xf32, #tpu.memory_space<vmem>>, %arg3: memref<8x8xf32, #tpu.memory_space<vmem>>, %arg4: memref<1x1xf32, #tpu.memory_space<smem>>, %arg5: memref<2x128x16xf32, #tpu.memory_space<vmem>>, %arg6: memref<8x16xf32, #tpu.memory_space<vmem>>, %arg7: memref<8x16xf32, #tpu.memory_space<vmem>>) attributes {dimension_semantics = [], scalar_prefetch = 0 : i64, scratch_operands = 0 : i64, tpu.core_type = #tpu.core_type<tc>} {
    %0 = tpu.iota {dimensions = array<i32: 1>} : vector<1x128xi32>
    %c64_i32 = arith.constant 64 : i32
    %1 = vector.broadcast %c64_i32 : i32 to vector<1x128xi32>
    %2 = arith.cmpi sge, %0, %1 : vector<1x128xi32>
    %3 = arith.extui %2 : vector<1x128xi1> to vector<1x128xi32>
    %4 = arith.sitofp %3 : vector<1x128xi32> to vector<1x128xf32>
    %cst = arith.constant 1.000000e+00 : f32
    %5 = vector.broadcast %cst : f32 to vector<1x128xf32>
    %6 = arith.subf %5, %4 : vector<1x128xf32>
    %7 = arith.sitofp %0 : vector<1x128xi32> to vector<1x128xf32>
    %cst_0 = arith.constant 6.400000e+01 : f32
    %8 = vector.broadcast %cst_0 : f32 to vector<1x128xf32>
    %9 = arith.mulf %4, %8 : vector<1x128xf32>
    %10 = arith.subf %7, %9 : vector<1x128xf32>
    %cst_1 = arith.constant 3.150000e+01 : f32
    %11 = vector.broadcast %cst_1 : f32 to vector<1x128xf32>
    %12 = arith.subf %10, %11 : vector<1x128xf32>
    %cst_2 = arith.constant 0.0307692308 : f32
    %13 = vector.broadcast %cst_2 : f32 to vector<1x128xf32>
    %14 = arith.mulf %12, %13 : vector<1x128xf32>
    %15 = arith.mulf %14, %6 : vector<1x128xf32>
    %16 = arith.mulf %14, %4 : vector<1x128xf32>
    %17 = arith.mulf %12, %12 : vector<1x128xf32>
    %cst_3 = arith.constant 0.000000e+00 : f32
    %18 = vector.broadcast %cst_3 : f32 to vector<1x128xf32>
    %19 = arith.subf %18, %17 : vector<1x128xf32>
    %cst_4 = arith.constant 5.000000e-01 : f32
    %20 = vector.broadcast %cst_4 : f32 to vector<1x128xf32>
    %21 = arith.mulf %19, %20 : vector<1x128xf32>
    %c0 = arith.constant 0 : index
    %c0_5 = arith.constant 0 : index
    %22 = vector.load %arg0[%c0, %c0_5] : memref<8x2xf32, #tpu.memory_space<vmem>>, vector<8x1xf32>
    %c0_6 = arith.constant 0 : index
    %c1 = arith.constant 1 : index
    %23 = vector.load %arg0[%c0_6, %c1] : memref<8x2xf32, #tpu.memory_space<vmem>>, vector<8x1xf32>
    %c0_7 = arith.constant 0 : index
    %c0_8 = arith.constant 0 : index
    %24 = vector.load %arg1[%c0_7, %c0_8] : memref<8x1xf32, #tpu.memory_space<vmem>>, vector<8x1xf32>
    %25 = vector.broadcast %22 : vector<8x1xf32> to vector<8x128xf32>
    %26 = vector.broadcast %15 : vector<1x128xf32> to vector<8x128xf32>
    %27 = arith.mulf %25, %26 : vector<8x128xf32>
    %28 = vector.broadcast %23 : vector<8x1xf32> to vector<8x128xf32>
    %29 = vector.broadcast %16 : vector<1x128xf32> to vector<8x128xf32>
    %30 = arith.mulf %28, %29 : vector<8x128xf32>
    %31 = arith.addf %27, %30 : vector<8x128xf32>
    %32 = vector.broadcast %24 : vector<8x1xf32> to vector<8x128xf32>
    %33 = arith.addf %31, %32 : vector<8x128xf32>
    %cst_9 = arith.constant 6.28318548 : f32
    %34 = vector.broadcast %cst_9 : f32 to vector<8x128xf32>
    %35 = arith.mulf %33, %34 : vector<8x128xf32>
    %36 = math.sin %35 : vector<8x128xf32>
    %cst_10 = arith.constant 0.214440972 : f32
    %37 = vector.broadcast %cst_10 : f32 to vector<8x128xf32>
    %38 = arith.mulf %36, %37 : vector<8x128xf32>
    %39 = vector.broadcast %6 : vector<1x128xf32> to vector<8x128xf32>
    %40 = arith.mulf %38, %39 : vector<8x128xf32>
    %41 = arith.subf %38, %40 : vector<8x128xf32>
    %c0_11 = arith.constant 0 : index
    %c0_12 = arith.constant 0 : index
    %42 = vector.load %arg2[%c0_11, %c0_12] : memref<8x8xf32, #tpu.memory_space<vmem>>, vector<8x8xf32>
    %cst_13 = arith.constant dense<0.000000e+00> : vector<8x128xf32>
    %43 = tpu.matmul %42, %40, %cst_13 {dimension_numbers = #tpu.dot_dimension_numbers<[1], [0], [0], [1], [0, 0, 1, 1], [], []>} : vector<8x8xf32>, vector<8x128xf32>, vector<8x128xf32> -> vector<8x128xf32>
    %c0_14 = arith.constant 0 : index
    %c0_15 = arith.constant 0 : index
    %44 = vector.load %arg3[%c0_14, %c0_15] : memref<8x8xf32, #tpu.memory_space<vmem>>, vector<8x8xf32>
    %cst_16 = arith.constant dense<0.000000e+00> : vector<8x128xf32>
    %45 = tpu.matmul %44, %41, %cst_16 {dimension_numbers = #tpu.dot_dimension_numbers<[1], [0], [0], [1], [0, 0, 1, 1], [], []>} : vector<8x8xf32>, vector<8x128xf32>, vector<8x128xf32> -> vector<8x128xf32>
    %46 = arith.addf %43, %45 : vector<8x128xf32>
    %47 = vector.broadcast %6 : vector<1x128xf32> to vector<8x128xf32>
    %48 = arith.mulf %46, %47 : vector<8x128xf32>
    %49 = vector.shape_cast %48 : vector<8x128xf32> to vector<1x8x128xf32>
    %cst_17 = arith.constant dense<0.000000e+00> : vector<1xf32>
    %50 = vector.multi_reduction <add>, %49, %cst_17 [1, 2] : vector<1x8x128xf32> to vector<1xf32>
    %51 = vector.shape_cast %50 : vector<1xf32> to vector<1x1x1xf32>
    %52 = vector.extract %51[0, 0, 0] : f32 from vector<1x1x1xf32>
    %cst_18 = arith.constant 5.120000e+02 : f32
    %53 = arith.divf %52, %cst_18 : f32
    %54 = vector.broadcast %4 : vector<1x128xf32> to vector<8x128xf32>
    %55 = arith.mulf %46, %54 : vector<8x128xf32>
    %56 = vector.shape_cast %55 : vector<8x128xf32> to vector<1x8x128xf32>
    %cst_19 = arith.constant dense<0.000000e+00> : vector<1xf32>
    %57 = vector.multi_reduction <add>, %56, %cst_19 [1, 2] : vector<1x8x128xf32> to vector<1xf32>
    %58 = vector.shape_cast %57 : vector<1xf32> to vector<1x1x1xf32>
    %59 = vector.extract %58[0, 0, 0] : f32 from vector<1x1x1xf32>
    %cst_20 = arith.constant 5.120000e+02 : f32
    %60 = arith.divf %59, %cst_20 : f32
    %61 = vector.broadcast %53 : f32 to vector<1x128xf32>
    %62 = arith.mulf %6, %61 : vector<1x128xf32>
    %63 = vector.broadcast %60 : f32 to vector<1x128xf32>
    %64 = arith.mulf %4, %63 : vector<1x128xf32>
    %65 = arith.addf %62, %64 : vector<1x128xf32>
    %66 = vector.broadcast %65 : vector<1x128xf32> to vector<8x128xf32>
    %67 = arith.subf %46, %66 : vector<8x128xf32>
    %68 = arith.mulf %67, %67 : vector<8x128xf32>
    %cst_21 = arith.constant dense<0.000000e+00> : vector<128xf32>
    %69 = vector.multi_reduction <add>, %68, %cst_21 [0] : vector<8x128xf32> to vector<128xf32>
    %70 = vector.shape_cast %69 : vector<128xf32> to vector<1x128xf32>
    %cst_22 = arith.constant 8.000000e+00 : f32
    %71 = vector.broadcast %cst_22 : f32 to vector<1x128xf32>
    %72 = arith.divf %70, %71 : vector<1x128xf32>
    %cst_23 = arith.constant 9.99999993E-9 : f32
    %73 = vector.broadcast %cst_23 : f32 to vector<1x128xf32>
    %74 = arith.addf %72, %73 : vector<1x128xf32>
    %75 = math.rsqrt %74 : vector<1x128xf32>
    %76 = vector.broadcast %75 : vector<1x128xf32> to vector<8x128xf32>
    %77 = arith.mulf %67, %76 : vector<8x128xf32>
    %c0_24 = arith.constant 0 : index
    %c0_25 = arith.constant 0 : index
    %78 = memref.load %arg4[%c0_24, %c0_25] : memref<1x1xf32, #tpu.memory_space<smem>>
    %79 = arith.mulf %78, %78 : f32
    %cst_26 = arith.constant 5.000000e+00 : f32
    %80 = arith.divf %79, %cst_26 : f32
    %cst_27 = arith.constant 1.000000e+00 : f32
    %81 = arith.addf %cst_27, %80 : f32
    %cst_28 = arith.constant 1.000000e+00 : f32
    %82 = arith.divf %cst_28, %81 : f32
    %83 = vector.broadcast %82 : f32 to vector<1x128xf32>
    %84 = arith.mulf %21, %83 : vector<1x128xf32>
    %85 = math.exp %84 : vector<1x128xf32>
    %86 = vector.broadcast %85 : vector<1x128xf32> to vector<8x128xf32>
    %87 = arith.mulf %77, %86 : vector<8x128xf32>
    %c0_29 = arith.constant 0 : index
    %c0_30 = arith.constant 0 : index
    %c0_31 = arith.constant 0 : index
    %88 = vector.load %arg5[%c0_29, %c0_30, %c0_31] : memref<2x128x16xf32, #tpu.memory_space<vmem>>, vector<1x128x16xf32>
    %89 = vector.shape_cast %88 : vector<1x128x16xf32> to vector<128x16xf32>
    %cst_32 = arith.constant dense<0.000000e+00> : vector<8x16xf32>
    %90 = tpu.matmul %87, %89, %cst_32 {dimension_numbers = #tpu.dot_dimension_numbers<[1], [0], [0], [1], [0, 0, 1, 1], [], []>} : vector<8x128xf32>, vector<128x16xf32>, vector<8x16xf32> -> vector<8x16xf32>
    %c0_33 = arith.constant 0 : index
    %c0_34 = arith.constant 0 : index
    %91 = vector.load %arg6[%c0_33, %c0_34] : memref<8x16xf32, #tpu.memory_space<vmem>>, vector<8x16xf32>
    tpu.vector_store %arg6[%c0_33, %c0_34], %90 {strides = array<i32>} : memref<8x16xf32, #tpu.memory_space<vmem>>, vector<8x16xf32>,
    %c1_35 = arith.constant 1 : index
    %c0_36 = arith.constant 0 : index
    %c0_37 = arith.constant 0 : index
    %92 = vector.load %arg5[%c1_35, %c0_36, %c0_37] : memref<2x128x16xf32, #tpu.memory_space<vmem>>, vector<1x128x16xf32>
    %93 = vector.shape_cast %92 : vector<1x128x16xf32> to vector<128x16xf32>
    %cst_38 = arith.constant dense<0.000000e+00> : vector<8x16xf32>
    %94 = tpu.matmul %87, %93, %cst_38 {dimension_numbers = #tpu.dot_dimension_numbers<[1], [0], [0], [1], [0, 0, 1, 1], [], []>} : vector<8x128xf32>, vector<128x16xf32>, vector<8x16xf32> -> vector<8x16xf32>
    %c0_39 = arith.constant 0 : index
    %c0_40 = arith.constant 0 : index
    %95 = vector.load %arg7[%c0_39, %c0_40] : memref<8x16xf32, #tpu.memory_space<vmem>>, vector<8x16xf32>
    tpu.vector_store %arg7[%c0_39, %c0_40], %94 {strides = array<i32>} : memref<8x16xf32, #tpu.memory_space<vmem>>, vector<8x16xf32>,
    return
  }
}

</mosaic_0001>

<bundles_post_ra>
// kernel: _forward_impl.1
= control target key start
LH: loop header
LB: loop body
LE: loop exit
PB: predicated region body
PF: predicated region fallthrough
CT: control target
= control target key end

     0   :  { %14 = vsyncpa [#allocation4], 0  ;;  %v859_v2 = vmov 0   ;;  %s1126_s0 = inlined_call_operand.vmem [shape: f32[8,2], index: 0, kind: input, shape index: {}]   ;;  %s1127_s1 = inlined_call_operand.vmem [shape: f32[8,1], index: 1, kind: input, shape index: {}]   ;;  %s1128_s2 = inlined_call_operand.vmem [shape: f32[8,8], index: 2, kind: input, shape index: {}]   ;;  %s1129_s3 = inlined_call_operand.vmem [shape: f32[8,8], index: 3, kind: input, shape index: {}]   ;;  %s1130_s4 = inlined_call_operand.<no memory space> [shape: f32[1,1], index: 4, kind: input, shape index: {}]   ;;  %s1131_s5 = inlined_call_operand.vmem [shape: f32[2,128,16], index: 5, kind: input, shape index: {}]   ;;  %s1132_s6 = inlined_call_operand.hbm [shape: f32[8,16], index: 6, kind: output, shape index: {0}]   ;;  %s1133_s7 = inlined_call_operand.hbm [shape: f32[8,16], index: 7, kind: output, shape index: {1}]  }
   0x1   :  { %v44_v0 = vld [vmem:[%s1126_s0] sm:$0xff]  ;;  %797 = vset.pattern.permute.xlu0 %v859_v2  ;;  %799 = vset.pattern.permute.xlu1 %v859_v2 }
   0x2   :  { %v45_v1 = vld [vmem:[%s1127_s1] sm:$0xff] }
   0x3   :  { %15 = vsyncpa [#allocation6], 0  ;;  %48 = vperm.xlu0 %797, %v44_v0   ;;  %60 = vperm.xlu1 %799, %v45_v1   ;;  %v860_v3 = vmov 0.0   ;;  %v861_v4 = vmov 1   ;;  %v28_v5 = vlaneseq  ;;  %vm862_vm0 = vmmov 0   ;;  %s366_s17 = smul.f32 %s1130_s4, %s1130_s4  ;;  %s870_s23 = smov [#allocation3]  }
   0x4   :  { %650 = vmatprep.subr.mxu0 %v860_v3  ;;  %645 = vmatprep.subr.mxu1 %v860_v3  ;;  %v863_v34 = vmov 683565275   ;;  %v864_v36 = vmov 2475754826   ;;  %v865_v39 = vmov 2131351028  }
   0x5   :  { %652 = vmatprep.mubr.msk.f32.mxu0 %vm862_vm0, %v860_v3  ;;  %647 = vmatprep.mubr.msk.f32.mxu1 %vm862_vm0, %v860_v3  ;;  %v29_v6 = vand.u32 127, %v28_v5  ;;  %v866_v42 = vmov 2102212464   ;;  %v867_v45 = vmov 920167782   ;;  %vm174_vm15 = vcmask 64512  }
   0x6   :  { %v868_v48 = vmov 1326507024   ;;  %s369_s18 = smul.f32 0.2, %s366_s17  ;;  %s561_s24 = sshll.u32 %s870_s23, 4  ;;  %s562_s24 = int_to_ptr.vmem [resolvable:$true] %s561_s24 }
   0x7   :  { %798 = vset.pattern.permute.xlu0 %v861_v4  ;;  %vm30_vm1 = vcmp.ge.s32.totalorder %v29_v6, 64  ;;  %v34_v8 = vcvt.s32.f32 %v29_v6  ;;  %s871_s25 = smov [#allocation5]   ;;  %s811_s27 = scalar_lea.vmem %s562_s24, 128 }
   0x8   :  { %53 = vperm.xlu0 %798, %v44_v0   ;;  %v925_v7 = vsel %vm30_vm1, 1.0, %v860_v3  ;;  %s370_s19 = sadd.f32 1.0, %s369_s18  ;;  %s571_s26 = sshll.u32 %s871_s25, 4  ;;  %s1095_s26 = int_to_ptr.vmem [resolvable:$true] %s571_s26 }
   0x9   :  { %v35_v9 = vmul.f32 64.0, %v925_v7  ;;  %v931_v12 = vsub.f32 1.0, %v925_v7  ;;  %p812_p0 = scmp.ne.s32.totalorder %s562_s24, %s811_s27  ;;  %p816_p1 = scmp.lt.s32.totalorder %s562_s24, %s562_s24 }
   0xa   :  { %p817_p2 = scmp.lt.s32.totalorder %s811_s27, %s811_s27 }
   0xb   :  { %v36_v10 = vsub.f32 %v34_v8, %v35_v9 }
   0xc   :  { %800 = vset.pattern.permute.xlu0 %v859_v2  ;;  %p818_p3 = por %p817_p2, %p816_p1 }
   0xd   :  { %v928_v11 = vadd.f32 -31.5, %v36_v10 }
   0xe   :  { %p819_p4 = pnand %p818_p3, %p812_p0 }
   0xf   :  { %v38_v13 = vmul.f32 0.03076923, %v928_v11 }
  0x11   :  { %v39_v15 = vmul.f32 %v38_v13, %v931_v12  ;;  %v40_v16 = vmul.f32 %v925_v7, %v38_v13 }
  0x82   :  { %v49_v14 = vpop.permute.xlu0 %48  ;;  %v61_v20 = vpop.permute.xlu1 %60 }
  0x83   :  { %v51_v18 = vmul.f32 %v49_v14, %v39_v15 }
  0x87   :  { %v54_v17 = vpop.permute.xlu0 %53 }
  0x88   :  { %v56_v19 = vmul.f32 %v54_v17, %v40_v16 }
  0x8a   :  { %v57_v21 = vadd.f32 %v56_v19, %v51_v18 }
  0x8c   :  { %v63_v22 = vadd.f32 %v61_v20, %v57_v21 }
  0x8e   :  { %v936_v23 = vmul.f32 6.2831855, %v63_v22 }
  0x90   :  { %v68_v24 = vand.u32 2139095040, %v936_v23  ;;  %v65_v28 = vand.u32 2147483647, %v936_v23  ;;  %vm67_vm9 = vcmp.lt.s32.totalorder %v936_v23, 0  ;;  %vm157_vm14 = vweird.f32 %v936_v23 }
  0x92   :  { %v69_v25 = vshrl.u32 %v68_v24, 23  ;;  %v72_v31 = vand.u32 8388607, %v65_v28  ;;  %vm66_vm10 = vcmp.le.f32.partialorder %v65_v28, 0.7853982 }
  0x94   :  { %v585_v26 = vadd.s32 4294967169, %v69_v25  ;;  %v73_v50 = vor.u32 8388608, %v72_v31 }
  0x96   :  { %v75_v27 = vadd.s32 1, %v585_v26  ;;  %v113_v0 = vshll.u32 %v73_v50, 8 }
  0x98   :  { %vm76_vm2 = vcmp.gt.s32.totalorder %v75_v27, 0 }
  0x99   :  { %v77_v29 = vsel %vm76_vm2, %v75_v27, 0 }
  0x9a   :  { %v79_v30 = vand.u32 31, %v77_v29  ;;  %v78_v33 = vshrl.u32 %v77_v29, 5 }
  0x9c   :  { %v80_v32 = vsub.s32 32, %v79_v30  ;;  %v82_v35 = vshll.u32 %v863_v34, %v79_v30  ;;  %v85_v37 = vshll.u32 %v864_v36, %v79_v30  ;;  %v88_v41 = vshll.u32 %v865_v39, %v79_v30 }
  0x9d   :  { %v91_v44 = vshll.u32 %v866_v42, %v79_v30  ;;  %v94_v47 = vshll.u32 %v867_v45, %v79_v30  ;;  %vm97_vm3 = vcmp.lt.s32.totalorder %v78_v33, 1  ;;  %vm100_vm4 = vcmp.lt.s32.totalorder %v78_v33, 4 }
  0x9e   :  { %v83_v38 = vshrl.u32 %v864_v36, %v80_v32  ;;  %v86_v40 = vshrl.u32 %v865_v39, %v80_v32  ;;  %v89_v43 = vshrl.u32 %v866_v42, %v80_v32  ;;  %v92_v46 = vshrl.u32 %v867_v45, %v80_v32 }
  0x9f   :  { %v95_v49 = vshrl.u32 %v868_v48, %v80_v32  ;;  %v81_v59 = vshrl.u32 %v863_v34, %v80_v32  ;;  %vm99_vm5 = vcmp.lt.s32.totalorder %v78_v33, 3  ;;  %vm98_vm6 = vcmp.lt.s32.totalorder %v78_v33, 2 }
  0xa0   :  { %v84_v51 = vor.u32 %v83_v38, %v82_v35  ;;  %v87_v52 = vor.u32 %v86_v40, %v85_v37  ;;  %v90_v53 = vor.u32 %v89_v43, %v88_v41  ;;  %v93_v54 = vor.u32 %v92_v46, %v91_v44 }
  0xa1   :  { %v96_v55 = vor.u32 %v95_v49, %v94_v47 }
  0xa2   :  { %v102_v56 = vsel %vm100_vm4, %v90_v53, 2102212464  ;;  %v105_v57 = vsel %vm97_vm3, %v84_v51, %v87_v52  ;;  %v109_v58 = vsel %vm97_vm3, %v87_v52, %v90_v53  ;;  %v106_v60 = vsel %vm100_vm4, %v93_v54, 920167782 }
  0xa3   :  { %v110_v61 = vsel %vm100_vm4, %v96_v55, 1326507024  ;;  %v107_v62 = vsel %vm99_vm5, %v90_v53, %v106_v60  ;;  %v101_v1 = vsel %vm97_vm3, %v81_v59, %v84_v51  ;;  %v103_v2 = vsel %vm99_vm5, %v87_v52, %v102_v56  ;;  %v173_v60 = vld [vmem:[%s1129_s3] sm:$0xff] }
  0xa4   :  { %v111_v63 = vsel %vm99_vm5, %v93_v54, %v110_v61  ;;  %v108_v4 = vsel %vm98_vm6, %v105_v57, %v107_v62  ;;  %v104_v13 = vsel %vm98_vm6, %v101_v1, %v103_v2 }
  0xa5   :  { %v112_v5 = vsel %vm98_vm6, %v109_v58, %v111_v63  ;;  %v945_v9 = vmul.u32.u64.low %v113_v0, %v108_v4  ;;  %v946_v10 = vmul.u32.u64.high %v113_v0, %v108_v4, %v945_v9  ;;  %v120_v15 = vmul.u32 %v113_v0, %v104_v13  ;;  %v172_v58 = vld [vmem:[%s1128_s2] sm:$0xff]  ;;  %v381_v13 = vld [vmem:[%s1131_s5 + $0x10] sm:$0xff] }
  0xa6   :  { %v942_v6 = vmul.u32.u64.low %v113_v0, %v112_v5  ;;  %v943_v8 = vmul.u32.u64.high %v113_v0, %v112_v5, %v942_v6  ;;  %v379_v4 = vld [vmem:[%s1131_s5] sm:$0xff] }
  0xa7   :  { %v123_v14 = vadd.s32 1, %v946_v10  ;;  %v591_v5 = vld [vmem:[%s1131_s5 + $0x80] sm:$0xff] }
  0xa8   :  { %vm122_vm7 = vc.u32 %v943_v8, %v945_v9  ;;  %v121_v29 = vadd.s32 %v945_v9, %v943_v8  ;;  %v592_v8 = vld [vmem:[%s1131_s5 + $0x88] sm:$0xff]  ;;  %v869_v9 = vmov 0.0|0.0  }
  0xa9   :  { %v124_v16 = vsel %vm122_vm7, %v123_v14, %v946_v10  ;;  %v750_v10 = vpack.c.bf16 %v592_v8, %v591_v5  ;;  %v382_v14 = vld [vmem:[%s1131_s5 + $0x18] sm:$0xff] }
  0xaa   :  { %v125_v17 = vadd.s32 %v124_v16, %v120_v15  ;;  %v593_v15 = vld [vmem:[%s1131_s5 + $0x90] sm:$0xff]  ;;  %v729_v16 = vpack.c.bf16 %v382_v14, %v381_v13 }
  0xac   :  { %v126_v18 = vadd.s32 536870912, %v125_v17 }
  0xae   :  { %v127_v19 = vshrl.u32 %v126_v18, 30 }
  0xb0   :  { %v128_v20 = vshll.u32 %v127_v19, 30  ;;  %v151_v41 = vsub.s32 4, %v127_v19 }
  0xb2   :  { %v129_v21 = vsub.s32 %v125_v17, %v128_v20  ;;  %v152_v44 = vsel %vm67_vm9, %v151_v41, %v127_v19  ;;  %v594_v17 = vld [vmem:[%s1131_s5 + $0x98] sm:$0xff]  ;;  %v383_v19 = vld [vmem:[%s1131_s5 + $0x20] sm:$0xff]  ;;  %v384_v20 = vld [vmem:[%s1131_s5 + $0x28] sm:$0xff] }
  0xb3   :  { %v154_v46 = vsel %vm66_vm10, 0, %v152_v44  ;;  %v753_v18 = vpack.c.bf16 %v594_v17, %v593_v15  ;;  %v601_v41 = vld [vmem:[%s1131_s5 + $0xd0] sm:$0xff] }
  0xb4   :  { %v131_v22 = vsub.s32 0, %v129_v21  ;;  %v158_v47 = vadd.s32 3, %v154_v46  ;;  %v392_v46 = vld [vmem:[%s1131_s5 + $0x68] sm:$0xff] }
  0xb6   :  { %v586_v24 = vmin.u32 %v131_v22, %v129_v21  ;;  %v159_v48 = vand.u32 3, %v158_v47  ;;  %v732_v22 = vpack.c.bf16 %v384_v20, %v383_v19  ;;  %v603_v47 = vld [vmem:[%s1131_s5 + $0xe0] sm:$0xff] }
  0xb8   :  { %v133_v25 = vclz %v586_v24  ;;  %vm164_vm11 = vcmp.eq.s32.totalorder %v159_v48, 2  ;;  %vm161_vm12 = vcmp.eq.s32.totalorder %v159_v48, 0  ;;  %vm160_vm13 = vcmp.lt.s32.totalorder %v159_v48, 2  ;;  %v596_v24 = vld [vmem:[%s1131_s5 + $0xa8] sm:$0xff] }
  0xba   :  { %v587_v26 = vadd.s32 4294967294, %v133_v25 }
  0xbc   :  { %vm588_vm8 = vcmp.lt.s32.totalorder %v587_v26, 0 }
  0xbd   :  { %v136_v27 = vsel %vm588_vm8, 0, %v587_v26  ;;  %v385_v26 = vld [vmem:[%s1131_s5 + $0x30] sm:$0xff] }
  0xbe   :  { %v137_v30 = vsub.s32 32, %v136_v27  ;;  %v141_v31 = vsub.s32 4294967266, %v136_v27  ;;  %v138_v32 = vshll.u32 %v129_v21, %v136_v27  ;;  %v595_v21 = vld [vmem:[%s1131_s5 + $0xa0] sm:$0xff]  ;;  %v386_v27 = vld [vmem:[%s1131_s5 + $0x38] sm:$0xff] }
  0xbf   :  { %v756_v25 = vpack.c.bf16 %v596_v24, %v595_v21 }
  0xc0   :  { %v139_v33 = vshrl.u32 %v121_v29, %v137_v30  ;;  %v142_v34 = vadd.s32 127, %v141_v31  ;;  %v597_v29 = vld [vmem:[%s1131_s5 + $0xb0] sm:$0xff]  ;;  %v735_v30 = vpack.c.bf16 %v386_v27, %v385_v26  ;;  %v598_v31 = vld [vmem:[%s1131_s5 + $0xb8] sm:$0xff] }
  0xc2   :  { %v140_v35 = vor.u32 %v139_v33, %v138_v32  ;;  %v143_v36 = vshll.u32 %v142_v34, 23  ;;  %v759_v32 = vpack.c.bf16 %v598_v31, %v597_v29  ;;  %v387_v33 = vld [vmem:[%s1131_s5 + $0x40] sm:$0xff]  ;;  %v388_v34 = vld [vmem:[%s1131_s5 + $0x48] sm:$0xff] }
  0xc4   :  { %v144_v37 = vor.u32 4788187, %v143_v36  ;;  %v147_v39 = vcvt.s32.f32 %v140_v35  ;;  %v599_v35 = vld [vmem:[%s1131_s5 + $0xc0] sm:$0xff]  ;;  %v738_v36 = vpack.c.bf16 %v388_v34, %v387_v33 }
  0xc6   :  { %v145_v38 = vand.u32 2147483647, %v144_v37  ;;  %v600_v37 = vld [vmem:[%s1131_s5 + $0xc8] sm:$0xff] }
  0xc8   :  { %v148_v40 = vmul.f32 %v147_v39, %v145_v38  ;;  %v762_v38 = vpack.c.bf16 %v600_v37, %v599_v35  ;;  %v389_v39 = vld [vmem:[%s1131_s5 + $0x50] sm:$0xff] }
  0xca   :  { %v149_v42 = vxor.u32 2147483648, %v148_v40 }
  0xcc   :  { %v150_v43 = vsel %vm67_vm9, %v149_v42, %v148_v40  ;;  %v390_v40 = vld [vmem:[%s1131_s5 + $0x58] sm:$0xff] }
  0xcd   :  { %v153_v45 = vsel %vm66_vm10, %v936_v23, %v150_v43  ;;  %v741_v42 = vpack.c.bf16 %v390_v40, %v389_v39  ;;  %v602_v43 = vld [vmem:[%s1131_s5 + $0xd8] sm:$0xff] }
  0xce   :  { %801 = vcosq.f32 %v153_v45  ;;  %v765_v44 = vpack.c.bf16 %v602_v43, %v601_v41 }
  0xcf   :  { %803 = vsinq.f32 %v153_v45  ;;  %v391_v45 = vld [vmem:[%s1131_s5 + $0x60] sm:$0xff] }
  0xd0   :  { %v744_v48 = vpack.c.bf16 %v392_v46, %v391_v45 }
  0xd8   :  { %v802_v49 = vpop.eup %801 }
  0xd9   :  { %v804_v50 = vpop.eup %803  ;;  %v165_v51 = vxor.u32 2147483648, %v802_v49 }
  0xda   :  { %v162_v52 = vxor.u32 2147483648, %v804_v50 }
  0xdb   :  { %v166_v53 = vsel %vm164_vm11, %v165_v51, %v804_v50  ;;  %v393_v51 = vld [vmem:[%s1131_s5 + $0x70] sm:$0xff] }
  0xdc   :  { %v163_v54 = vsel %vm161_vm12, %v802_v49, %v162_v52  ;;  %v604_v49 = vld [vmem:[%s1131_s5 + $0xe8] sm:$0xff]  ;;  %v394_v52 = vld [vmem:[%s1131_s5 + $0x78] sm:$0xff] }
  0xdd   :  { %v167_v28 = vsel %vm160_vm13, %v163_v54, %v166_v53  ;;  %v768_v50 = vpack.c.bf16 %v604_v49, %v603_v47  ;;  %v605_v53 = vld [vmem:[%s1131_s5 + $0xf0] sm:$0xff]  ;;  %v747_v54 = vpack.c.bf16 %v394_v52, %v393_v51 }
  0xde   :  { %v168_v55 = vsel %vm157_vm14, nan, %v167_v28  ;;  %v606_v28 = vld [vmem:[%s1131_s5 + $0xf8] sm:$0xff] }
  0xdf   :  { %v169_v56 = vmul.f32 0.21444097, %v168_v55  ;;  %v771_v55 = vpack.c.bf16 %v606_v28, %v605_v53 }
  0xe1   :  { %v170_v57 = vmul.f32 %v169_v56, %v931_v12 }
  0xe3   :  { %651 = vmatpush3.msra.mxu0 %v170_v57  ;;  %v171_v59 = vsub.f32 %v169_v56, %v170_v57  ;;  %v371_v56 = vstv %s370_s19 }
  0xe4   :  { %653 = vmatmul.mubr.msk.f32.vlgmr.msra.gmra.mrb[0].mxu0 %vm174_vm15, %v172_v58  ;;  %749 = vmatprep.subr.bf16.mxu0 %v869_v9  ;;  %805 = vrcp.f32 %v371_v56 }
  0xe5   :  { %646 = vmatpush3.msra.mxu1 %v171_v59  ;;  %722 = vmatprep.mubr.msk.f32.mxu0 %vm862_vm0, %v860_v3 }
  0xe6   :  { %648 = vmatmul.mubr.msk.f32.vlgmr.msra.gmra.mrb[0].mxu1 %vm174_vm15, %v173_v60  ;;  %725 = vmatprep.subr.bf16.mxu1 %v869_v9 }
  0xe7   :  { %687 = vmatprep.mubr.msk.f32.mxu1 %vm862_vm0, %v860_v3  ;;  %v380_v3 = vld [vmem:[%s1131_s5 + $0x8] sm:$0xff]  ;;  %751 = vmatpush3.bf16.msra.mxu0 %v750_v10  ;;  %vm465_vm0 = vcmask 130048  }
  0xe8   :  { %v726_v6 = vpack.c.bf16 %v380_v3, %v379_v4  ;;  %752 = vmatprep.subr.bf16.mxu0 %v869_v9 }
  0xea   :  { %727 = vmatpush3.bf16.msra.mxu1 %v726_v6 }
  0xeb   :  { %728 = vmatprep.subr.bf16.mxu1 %v869_v9  ;;  %754 = vmatpush3.bf16.msra.mxu0 %v753_v18 }
  0xec   :  { %755 = vmatprep.subr.bf16.mxu0 %v869_v9 }
  0xee   :  { %730 = vmatpush3.bf16.msra.mxu1 %v729_v16  ;;  %v806_v8 = vpop.eup %805  ;;  %v41_v16 = vmul.f32 %v928_v11, %v928_v11 }
  0xef   :  { %731 = vmatprep.subr.bf16.mxu1 %v869_v9  ;;  %757 = vmatpush3.bf16.msra.mxu0 %v756_v25 }
  0xf0   :  { %758 = vmatprep.subr.bf16.mxu0 %v869_v9  ;;  %v42_v19 = vsub.f32 0.0, %v41_v16 }
  0xf2   :  { %733 = vmatpush3.bf16.msra.mxu1 %v732_v22  ;;  %v43_v22 = vmul.f32 0.5, %v42_v19 }
  0xf3   :  { %734 = vmatprep.subr.bf16.mxu1 %v869_v9  ;;  %760 = vmatpush3.bf16.msra.mxu0 %v759_v32 }
  0xf4   :  { %761 = vmatprep.subr.bf16.mxu0 %v869_v9 }
  0xf6   :  { %736 = vmatpush3.bf16.msra.mxu1 %v735_v30 }
  0xf7   :  { %737 = vmatprep.subr.bf16.mxu1 %v869_v9  ;;  %763 = vmatpush3.bf16.msra.mxu0 %v762_v38 }
  0xf8   :  { %764 = vmatprep.subr.bf16.mxu0 %v869_v9 }
  0xfa   :  { %739 = vmatpush3.bf16.msra.mxu1 %v738_v36 }
  0xfb   :  { %740 = vmatprep.subr.bf16.mxu1 %v869_v9  ;;  %766 = vmatpush3.bf16.msra.mxu0 %v765_v44 }
  0xfc   :  { %767 = vmatprep.subr.bf16.mxu0 %v869_v9 }
  0xfe   :  { %742 = vmatpush3.bf16.msra.mxu1 %v741_v42 }
  0xff   :  { %743 = vmatprep.subr.bf16.mxu1 %v869_v9  ;;  %769 = vmatpush3.bf16.msra.mxu0 %v768_v50 }
 0x100   :  { %770 = vmatprep.subr.bf16.mxu0 %v869_v9 }
 0x102   :  { %745 = vmatpush3.bf16.msra.mxu1 %v744_v48 }
 0x103   :  { %746 = vmatprep.subr.bf16.mxu1 %v869_v9  ;;  %772 = vmatpush3.bf16.msra.mxu0 %v771_v55 }
 0x106   :  { %748 = vmatpush3.bf16.msra.mxu1 %v747_v54 }
 0x1b7   :  { %v317_v23 = vpop.f32.mrb[0].mxu0 }
 0x1b8   :  { %v654_v61 = vpop.f32.mrb[1].mxu0 }
 0x1b9   :  { %v244_v62 = vpop.f32.mrb[0].mxu1 }
 0x1ba   :  { %v968_v63 = vadd.f32 %v317_v23, %v244_v62  ;;  %v649_v0 = vpop.f32.mrb[1].mxu1 }
 0x1bc   :  { %v334_v1 = vmul.f32 %v925_v7, %v968_v63  ;;  %v321_v2 = vmul.f32 %v968_v63, %v931_v12 }
 0x1be   :  { %335 = vadd.xlane.f32.xlu0 %v334_v1  ;;  %322 = vadd.xlane.f32.xlu1 %v321_v2 }
 0x24b   :  { %v336_v57 = vpop.xlane.xlu0 %335  ;;  %v323_v58 = vpop.xlane.xlu1 %322 }
 0x24c   :  { %v337_v59 = vrot.slane %v336_v57, 4  ;;  %v324_v60 = vrot.slane %v323_v58, 4 }
 0x24e   :  { %v338_v23 = vadd.f32 %v337_v59, %v336_v57  ;;  %v325_v61 = vadd.f32 %v324_v60, %v323_v58 }
 0x250   :  { %v339_v62 = vrot.slane %v338_v23, 2  ;;  %v326_v0 = vrot.slane %v325_v61, 2 }
 0x252   :  { %v340_v1 = vadd.f32 %v339_v62, %v338_v23  ;;  %v327_v2 = vadd.f32 %v326_v0, %v325_v61 }
 0x254   :  { %v328_v4 = vrot.slane %v327_v2, 1  ;;  %v341_v3 = vrot.slane %v340_v1, 1 }
 0x256   :  { %v329_v5 = vadd.f32 %v328_v4, %v327_v2  ;;  %v342_v6 = vadd.f32 %v341_v3, %v340_v1 }
 0x258   :  { %778 = vpush %v329_v5 }
 0x259   :  { %780 = vpush %v342_v6 }
 0x25a   :  { %782 = vpush %v806_v8 }
 0x289   :  { %s779_s4 = spop %778 }
 0x28a   :  { %s333_s5 = smul.f32 0.001953125, %s779_s4  ;;  %s781_s20 = spop %780 }
 0x28b   :  { %s346_s21 = smul.f32 0.001953125, %s781_s20  ;;  %s783_s22 = spop %782 }
 0x28c   :  { %v347_v9 = vstv %s333_s5  ;;  %v374_v25 = vstv %s783_s22 }
 0x28d   :  { %v348_v10 = vmul.f32 %v347_v9, %v931_v12  ;;  %v349_v13 = vstv %s346_s21  ;;  %v375_v27 = vmul.f32 %v374_v25, %v43_v22 }
 0x28e   :  { %v350_v14 = vmul.f32 %v925_v7, %v349_v13 }
 0x28f   :  { %v376_v30 = vmul.f32 1.442695, %v375_v27 }
 0x290   :  { %v351_v15 = vadd.f32 %v350_v14, %v348_v10 }
 0x291   :  { %807 = vpow2.f32 %v376_v30 }
 0x292   :  { %v352_v17 = vsub.f32 %v968_v63, %v351_v15 }
 0x294   :  { %v353_v18 = vmul.f32 %v352_v17, %v352_v17 }
 0x296   :  { %v354_v20 = vrot.slane %v353_v18, 4 }
 0x298   :  { %v355_v21 = vadd.f32 %v354_v20, %v353_v18 }
 0x29a   :  { %v356_v24 = vrot.slane %v355_v21, 2 }
 0x29b   :  { %v808_v11 = vpop.eup %807 }
 0x29c   :  { %v357_v26 = vadd.f32 %v356_v24, %v355_v21 }
 0x29e   :  { %v358_v12 = vrot.slane %v357_v26, 1 }
 0x2a0   :  { %v359_v29 = vadd.f32 %v358_v12, %v357_v26 }
 0x2a2   :  { %v361_v7 = vmul.f32 0.125, %v359_v29 }
 0x2a4   :  { %v362_v31 = vadd.f32 1e-08, %v361_v7 }
 0x2a6   :  { %809 = vrsqrt.f32 %v362_v31 }
 0x2b0   :  { %v810_v32 = vpop.eup %809 }
 0x2b1   :  { %v364_v63 = vmul.f32 %v810_v32, %v352_v17 }
 0x2b3   :  { %v378_v33 = vmul.f32 %v808_v11, %v364_v63 }
 0x2b5   :  { %688 = vmatmul.mubr.f32.vlgmr.msra.gmra.mrb[2].mxu1 %v378_v33  ;;  %723 = vmatmul.mubr.f32.vlgmr.msra.gmra.mrb[2].mxu0 %v378_v33 }
 0x388   :  { %v461_v34 = vpop.f32.mrb[2].mxu1  ;;  %v550_v35 = vpop.f32.mrb[2].mxu0 }
 0x389   :  { %554 = vst.msk [vmem:[#allocation5] sm:$0xff] %vm465_vm0, %v550_v35  ;;  %466 = vst.msk [vmem:[#allocation3] sm:$0xff] %vm465_vm0, %v461_v34  ;;  %v689_v36 = vpop.f32.mrb[3].mxu1  ;;  %v724_v37 = vpop.f32.mrb[3].mxu0 }
 0x38a   :  { %822 = shalt.err (!%p819_p4)
}
 0x38b   :  { %s823_s28 = scalar_lea.hbm %s1132_s6, 128 }
 0x38c   :  { %p824_p5 = scmp.ne.s32.totalorder %s1132_s6, %s823_s28  ;;  %p827_p6 = scmp.lt.u32.totalorder %s823_s28, %s1132_s6 }
 0x38e   :  { %p829_p7 = pnand %p827_p6, %p824_p5 }
 0x390   :  { %832 = shalt.err (!%p829_p7)
}
 0x391   :  { %564 = dma.vmem_to_hbm [thread:$0]  %s562_s24, 128, %s1132_s6, [#allocation4]  }
 0x392   :  { %s833_s10 = scalar_lea.vmem %s1095_s26, 128  ;;  %p838_p9 = scmp.lt.s32.totalorder %s1095_s26, %s1095_s26 }
 0x393   :  { %p834_p8 = scmp.ne.s32.totalorder %s1095_s26, %s833_s10  ;;  %p839_p10 = scmp.lt.s32.totalorder %s833_s10, %s833_s10 }
 0x395   :  { %p840_p11 = por %p839_p10, %p838_p9 }
 0x397   :  { %p841_p12 = pnand %p840_p11, %p834_p8 }
 0x399   :  { %844 = shalt.err (!%p841_p12)
}
 0x39a   :  { %s845_s13 = scalar_lea.hbm %s1133_s7, 128 }
 0x39b   :  { %p846_p13 = scmp.ne.s32.totalorder %s1133_s7, %s845_s13  ;;  %p849_p0 = scmp.lt.u32.totalorder %s845_s13, %s1133_s7 }
 0x39d   :  { %p851_p1 = pnand %p849_p0, %p846_p13 }
 0x39f   :  { %854 = shalt.err (!%p851_p1)
}
 0x3a0   :  { %574 = dma.vmem_to_hbm [thread:$0]  %s1095_s26, 128, %s1133_s7, [#allocation6]  }
 0x3a1   :  { %855 = dma.done.wait [#allocation4], 128  }
 0x3a2   :  { %856 = vsyncadd [#allocation4], 4294967168 }
 0x3a3   :  { %857 = dma.done.wait [#allocation6], 128  }
 0x3a4   :  { %858 = vsyncadd [#allocation6], 4294967168 }
 0x3a5   :  { %581 = vsyncpa [#allocation4], 1 }
 0x3a6   :  { %582 = vsyncpa [#allocation6], 1 }

</bundles_post_ra>
